<compile_context>
chip_gen: v7x
topology: tpu7x:2x2x1
jax: 0.10.0
libtpu: 0.0.40
codegen_flags: <defaults>
</compile_context>

<pallas_src>
import functools
import math

import jax
import jax.numpy as jnp
from jax import lax
from jax.experimental import pallas as pl
from jax.experimental.pallas import tpu as pltpu


def _ntxent_kernel(temp_ref, x_ref, y_ref, out_ref, *, batch_size, matmul_dtype):
    # x_ref/y_ref: (bb, N, D) feature blocks; out_ref: (1, 8, 128) partial-sum tile.
    x = x_ref[...].astype(jnp.float32)
    y = y_ref[...].astype(jnp.float32)
    bb, n, _ = x.shape
    temp = temp_ref[0]

    # F.normalize(p=2, dim=-1): x / max(||x||,1e-12) == x * rsqrt(max(||x||^2,1e-24)).
    # Temperature folded into xn's per-row scale (free: fuses into an existing
    # (bb,N,1) multiply), so s = temp * <x_hat, y_hat> with no NxN multiply.
    xn = x * (temp * lax.rsqrt(jnp.maximum(jnp.sum(x * x, -1, keepdims=True), 1e-24)))
    yn = y * lax.rsqrt(jnp.maximum(jnp.sum(y * y, -1, keepdims=True), 1e-24))

    # Positive (diagonal) logits straight from the normalized features (f32, VPU).
    diag = jnp.sum(xn * yn, axis=-1)                                  # (bb, N)

    # Single MXU matmul (bf16 operands on v6e/v7x, f32 accumulate).
    # "other vs input" logits are s^T -> handled via column reductions below.
    s = jnp.einsum("bnd,bmd->bnm",
                   xn.astype(matmul_dtype), yn.astype(matmul_dtype),
                   preferred_element_type=jnp.float32)                # (bb, N, N)

    # logsumexp over row i and column i of s with the diagonal excluded.
    # One shared per-batch max + a single exp pass; the diagonal contribution
    # (once from the row sum, once from the column sum) is subtracted instead
    # of being masked with -inf.
    m = jnp.max(s, axis=-1, keepdims=True)                            # (bb, N, 1)
    m = jnp.max(m, axis=-2, keepdims=True)                            # (bb, 1, 1)
    e = jnp.exp(s - m)                                                # single EUP pass
    m = m[:, :, 0]                                                    # (bb, 1)
    row_sum = jnp.sum(e, axis=-1)                                     # (bb, N)
    col_sum = jnp.sum(e, axis=-2)                                     # (bb, N)
    denom = row_sum + col_sum - 2.0 * jnp.exp(diag - m)               # (bb, N)
    lse = m + jnp.log(jnp.maximum(denom, 1e-30))                      # clamp: degenerate temps

    loss_terms = lse - diag                                           # (bb, N)

    # Zero out padded batch rows (only compiled when the wrapper padded B).
    if batch_size % bb:
        base = pl.program_id(0) * bb
        bidx = base + lax.broadcasted_iota(jnp.int32, (bb, 1), 0)
        loss_terms = jnp.where(bidx < batch_size, loss_terms, 0.0)

    partial = jnp.sum(loss_terms)
    out_ref[...] = jnp.zeros((1, 8, 128), jnp.float32) + partial      # full-tile write


def _scoped_vmem_limit():
    """Scoped-VMEM target: ~3/4 of per-core VMEM, capped at 96 MiB.

    v5e/v6e (128 MiB) -> 96 MiB; v7x (64 MiB per TensorCore) -> 48 MiB.
    """
    try:
        cap = int(pltpu.get_tpu_info().vmem_capacity_bytes)
    except Exception:
        cap = 64 << 20  # most conservative: v7x per-TensorCore VMEM
    return min(cap * 3 // 4, 96 << 20)


def _pick_block_batch(B, N, D, budget_bytes):
    """Largest per-step batch block that fits the VMEM budget.

    Counts double-buffering on both pipelined inputs, the bf16 MXU operands,
    and the live f32 NxN intermediates (s, exp(s-m), reduction temps).
    """
    per_batch = (2 * 2 * N * D * 4      # 2 inputs x 2 pipeline buffers, f32
                 + 2 * N * D * 2        # bf16 MXU operands
                 + 4 * N * N * 4        # live NxN f32 intermediates
                 + 8 * N * 4)           # (bb, N) row vectors
    cap = max(1, budget_bytes // per_batch)
    if B >= 2:
        # Guarantee >= 2 grid steps so the "parallel" axis can feed both
        # TensorCores on v7x megacore; no-op on single-core chips.
        cap = min(cap, -(-B // 2))
    cap = min(cap, B)
    # Prefer an exact divisor of B (no padded work) when one is close to the
    # cap; otherwise take the cap and pad the batch in the wrapper.
    best_div = max(d for d in range(1, cap + 1) if B % d == 0)
    return best_div if 2 * best_div > cap else cap


def ntxent_loss(input_feat, other_feat, log_temperature,
                min_temperature=None, max_temperature=None,
                matmul_dtype=jnp.bfloat16):
    """NT-Xent loss (reduction='mean'), single device (world_size == 1)."""
    B, N, D = input_feat.shape
    assert other_feat.shape == (B, N, D)
    assert N >= 2, "NT-Xent needs >= 2 samples along dim=-2 (otherwise lse is -inf)"

    # clamp_log_temperature + temperature = exp(-log_temperature)  (scalar glue)
    log_t = jnp.asarray(log_temperature, jnp.float32)
    if min_temperature is not None:
        log_t = jnp.maximum(log_t, math.log(min_temperature))
    if max_temperature is not None:
        log_t = jnp.minimum(log_t, math.log(max_temperature))
    temperature = jnp.exp(-log_t).reshape(1)

    vmem_limit = _scoped_vmem_limit()
    bb = _pick_block_batch(B, N, D, budget_bytes=vmem_limit // 2)
    g = (B + bb - 1) // bb
    b_pad = g * bb

    x, y = input_feat, other_feat
    if b_pad != B:
        pad = ((0, b_pad - B), (0, 0), (0, 0))
        x = jnp.pad(x, pad)
        y = jnp.pad(y, pad)

    kernel = functools.partial(_ntxent_kernel, batch_size=B, matmul_dtype=matmul_dtype)

    partials = pl.pallas_call(
        kernel,
        out_shape=jax.ShapeDtypeStruct((g, 8, 128), jnp.float32),
        grid=(g,),
        in_specs=[
            pl.BlockSpec(memory_space=pltpu.MemorySpace.SMEM),     # temperature (1,)
            pl.BlockSpec((bb, N, D), lambda i: (i, 0, 0)),         # input block
            pl.BlockSpec((bb, N, D), lambda i: (i, 0, 0)),         # other block
        ],
        out_specs=pl.BlockSpec((1, 8, 128), lambda i: (i, 0, 0)),
        compiler_params=pltpu.CompilerParams(
            dimension_semantics=("parallel",),   # independent per-block outputs
            vmem_limit_bytes=vmem_limit,
        ),
    )(temperature, x, y)

    # reduction="mean" over all B*N samples (padded blocks already zeroed in-kernel)
    return jnp.sum(partials[:, 0, 0]) / jnp.float32(B * N)


def _ref_ntxent(x, y, log_temperature):
    """Pure-JAX reference matching the PyTorch forward (world_size=1)."""
    x = x.astype(jnp.float32)
    y = y.astype(jnp.float32)
    x = x / jnp.maximum(jnp.linalg.norm(x, axis=-1, keepdims=True), 1e-12)
    y = y / jnp.maximum(jnp.linalg.norm(y, axis=-1, keepdims=True), 1e-12)
    temp = jnp.exp(-jnp.asarray(log_temperature, jnp.float32))
    s = jnp.einsum("bnd,bmd->bnm", x, y) * temp  # input @ other^T
    t = jnp.einsum("bnd,bmd->bnm", y, x) * temp  # other @ input^T
    n = x.shape[-2]
    eye = jnp.eye(n, dtype=bool)
    diag = jnp.diagonal(s, axis1=-2, axis2=-1)
    cat = jnp.concatenate(
        [jnp.where(eye, -jnp.inf, t), jnp.where(eye, -jnp.inf, s)], axis=-1)
    lse = jax.scipy.special.logsumexp(cat, axis=-1)
    return jnp.mean(-diag + lse)


if __name__ == "__main__":
    # Deterministic parameter init (module __init__: log_temperature scalar).
    temperature_init = 0.5
    log_temperature = jnp.float32(math.log(temperature_init))

    B, N, D = 2, 8, 32
    key = jax.random.PRNGKey(0)
    k1, k2 = jax.random.split(key)
    input_feat = jax.random.normal(k1, (B, N, D), dtype=jnp.float32)
    other_feat = jax.random.normal(k2, (B, N, D), dtype=jnp.float32)

    ref = _ref_ntxent(input_feat, other_feat, log_temperature)

    # Exact-path check (f32 MXU operands).
    loss_f32 = ntxent_loss(input_feat, other_feat, log_temperature,
                           matmul_dtype=jnp.float32)
    loss_f32 = jax.block_until_ready(loss_f32)
    assert jnp.allclose(loss_f32, ref, rtol=1e-5, atol=1e-5), (loss_f32, ref)

    # Default path: bf16 MXU operands (native rate on v6e/v7x), f32 accumulate.
    loss_bf16 = ntxent_loss(input_feat, other_feat, log_temperature)
    loss_bf16 = jax.block_until_ready(loss_bf16)
    assert jnp.allclose(loss_bf16, ref, rtol=1e-2, atol=1e-2), (loss_bf16, ref)

    print("KERNEL_OK")
</pallas_src>

<mosaic_0001>
module attributes {stable_mosaic.version = 11 : i64} {
  func.func @_ntxent_kernel(%arg0: i32, %arg1: memref<1xf32, #tpu.memory_space<smem>>, %arg2: memref<1x8x32xf32, #tpu.memory_space<vmem>>, %arg3: memref<1x8x32xf32, #tpu.memory_space<vmem>>, %arg4: memref<1x8x128xf32, #tpu.memory_space<vmem>>) attributes {dimension_semantics = [#tpu.dimension_semantics<parallel>], iteration_bounds = array<i64: 2>, scalar_prefetch = 0 : i64, scratch_operands = 0 : i64, tpu.core_type = #tpu.core_type<tc>, window_params = [{transform_indices = @transform_0, window_bounds = array<i64: 1>}, {transform_indices = @transform_1, window_bounds = array<i64: 1, 8, 32>}, {transform_indices = @transform_2, window_bounds = array<i64: 1, 8, 32>}, {transform_indices = @transform_3, window_bounds = array<i64: 1, 8, 128>}]} {
    %c0 = arith.constant 0 : index
    %c0_0 = arith.constant 0 : index
    %c0_1 = arith.constant 0 : index
    %0 = vector.load %arg2[%c0, %c0_0, %c0_1] : memref<1x8x32xf32, #tpu.memory_space<vmem>>, vector<1x8x32xf32>
    %c0_2 = arith.constant 0 : index
    %c0_3 = arith.constant 0 : index
    %c0_4 = arith.constant 0 : index
    %1 = vector.load %arg3[%c0_2, %c0_3, %c0_4] : memref<1x8x32xf32, #tpu.memory_space<vmem>>, vector<1x8x32xf32>
    %c0_5 = arith.constant 0 : index
    %2 = memref.load %arg1[%c0_5] : memref<1xf32, #tpu.memory_space<smem>>
    %3 = arith.mulf %0, %0 : vector<1x8x32xf32>
    %cst = arith.constant dense<0.000000e+00> : vector<1x8xf32>
    %4 = vector.multi_reduction <add>, %3, %cst [2] : vector<1x8x32xf32> to vector<1x8xf32>
    %5 = vector.shape_cast %4 : vector<1x8xf32> to vector<1x8x1xf32>
    %cst_6 = arith.constant 1.000000e-24 : f32
    %6 = vector.broadcast %cst_6 : f32 to vector<1x8x1xf32>
    %7 = arith.maximumf %5, %6 : vector<1x8x1xf32>
    %8 = math.rsqrt %7 : vector<1x8x1xf32>
    %9 = vector.broadcast %2 : f32 to vector<1x8x1xf32>
    %10 = arith.mulf %9, %8 : vector<1x8x1xf32>
    %11 = vector.broadcast %10 : vector<1x8x1xf32> to vector<1x8x32xf32>
    %12 = arith.mulf %0, %11 : vector<1x8x32xf32>
    %13 = arith.mulf %1, %1 : vector<1x8x32xf32>
    %cst_7 = arith.constant dense<0.000000e+00> : vector<1x8xf32>
    %14 = vector.multi_reduction <add>, %13, %cst_7 [2] : vector<1x8x32xf32> to vector<1x8xf32>
    %15 = vector.shape_cast %14 : vector<1x8xf32> to vector<1x8x1xf32>
    %cst_8 = arith.constant 1.000000e-24 : f32
    %16 = vector.broadcast %cst_8 : f32 to vector<1x8x1xf32>
    %17 = arith.maximumf %15, %16 : vector<1x8x1xf32>
    %18 = math.rsqrt %17 : vector<1x8x1xf32>
    %19 = vector.broadcast %18 : vector<1x8x1xf32> to vector<1x8x32xf32>
    %20 = arith.mulf %1, %19 : vector<1x8x32xf32>
    %21 = arith.mulf %12, %20 : vector<1x8x32xf32>
    %cst_9 = arith.constant dense<0.000000e+00> : vector<1x8xf32>
    %22 = vector.multi_reduction <add>, %21, %cst_9 [2] : vector<1x8x32xf32> to vector<1x8xf32>
    "tpu.trace_start"() <{level = 10 : i32, message = "bnd,bmd->bnm"}> : () -> ()
    %cst_10 = arith.constant dense<0.000000e+00> : vector<1x8x8xf32>
    %23 = tpu.matmul %12, %20, %cst_10 {dimension_numbers = #tpu.dot_dimension_numbers<[2], [2], [1], [1], [0, 0, 0, 1, 1, 1], [0], [0]>} : vector<1x8x32xf32>, vector<1x8x32xf32>, vector<1x8x8xf32> -> vector<1x8x8xf32>
    "tpu.trace_stop"() : () -> ()
    %cst_11 = arith.constant dense<0xFF800000> : vector<1x8xf32>
    %24 = vector.multi_reduction <maximumf>, %23, %cst_11 [2] : vector<1x8x8xf32> to vector<1x8xf32>
    %25 = vector.shape_cast %24 : vector<1x8xf32> to vector<1x8x1xf32>
    %cst_12 = arith.constant dense<0xFF800000> : vector<1x1xf32>
    %26 = vector.multi_reduction <maximumf>, %25, %cst_12 [1] : vector<1x8x1xf32> to vector<1x1xf32>
    %27 = vector.shape_cast %26 : vector<1x1xf32> to vector<1x1x1xf32>
    %28 = vector.broadcast %27 : vector<1x1x1xf32> to vector<1x8x8xf32>
    %29 = arith.subf %23, %28 : vector<1x8x8xf32>
    %30 = math.exp %29 : vector<1x8x8xf32>
    %31 = vector.shape_cast %27 : vector<1x1x1xf32> to vector<1x1xf32>
    %cst_13 = arith.constant dense<0.000000e+00> : vector<1x8xf32>
    %32 = vector.multi_reduction <add>, %30, %cst_13 [2] : vector<1x8x8xf32> to vector<1x8xf32>
    %cst_14 = arith.constant dense<0.000000e+00> : vector<1x8xf32>
    %33 = vector.multi_reduction <add>, %30, %cst_14 [1] : vector<1x8x8xf32> to vector<1x8xf32>
    %34 = arith.addf %32, %33 : vector<1x8xf32>
    %35 = vector.broadcast %31 : vector<1x1xf32> to vector<1x8xf32>
    %36 = arith.subf %22, %35 : vector<1x8xf32>
    %37 = math.exp %36 : vector<1x8xf32>
    %cst_15 = arith.constant 2.000000e+00 : f32
    %38 = vector.broadcast %cst_15 : f32 to vector<1x8xf32>
    %39 = arith.mulf %38, %37 : vector<1x8xf32>
    %40 = arith.subf %34, %39 : vector<1x8xf32>
    %cst_16 = arith.constant 1.000000e-30 : f32
    %41 = vector.broadcast %cst_16 : f32 to vector<1x8xf32>
    %42 = arith.maximumf %40, %41 : vector<1x8xf32>
    %43 = math.log %42 : vector<1x8xf32>
    %44 = vector.broadcast %31 : vector<1x1xf32> to vector<1x8xf32>
    %45 = arith.addf %44, %43 : vector<1x8xf32>
    %46 = arith.subf %45, %22 : vector<1x8xf32>
    %47 = vector.shape_cast %46 : vector<1x8xf32> to vector<1x1x8xf32>
    %cst_17 = arith.constant dense<0.000000e+00> : vector<1xf32>
    %48 = vector.multi_reduction <add>, %47, %cst_17 [1, 2] : vector<1x1x8xf32> to vector<1xf32>
    %49 = vector.shape_cast %48 : vector<1xf32> to vector<1x1x1xf32>
    %50 = vector.extract %49[0, 0, 0] : f32 from vector<1x1x1xf32>
    %cst_18 = arith.constant 0.000000e+00 : f32
    %51 = vector.broadcast %cst_18 : f32 to vector<1x8x128xf32>
    %52 = vector.broadcast %50 : f32 to vector<1x8x128xf32>
    %53 = arith.addf %51, %52 : vector<1x8x128xf32>
    %c0_19 = arith.constant 0 : index
    %c0_20 = arith.constant 0 : index
    %c0_21 = arith.constant 0 : index
    %54 = vector.load %arg4[%c0_19, %c0_20, %c0_21] : memref<1x8x128xf32, #tpu.memory_space<vmem>>, vector<1x8x128xf32>
    tpu.vector_store %arg4[%c0_19, %c0_20, %c0_21], %53 {strides = array<i32>} : memref<1x8x128xf32, #tpu.memory_space<vmem>>, vector<1x8x128xf32>,
    return
  }
  func.func @transform_0(%arg0: i32) -> i32 {
    %c0_i32 = arith.constant 0 : i32
    %c0_i32_0 = arith.constant 0 : i32
    return %c0_i32 : i32
  }
  func.func @transform_1(%arg0: i32) -> (i32, i32, i32) {
    %c0_i32 = arith.constant 0 : i32
    %c0_i32_0 = arith.constant 0 : i32
    %c0_i32_1 = arith.constant 0 : i32
    return %arg0, %c0_i32, %c0_i32_0 : i32, i32, i32
  }
  func.func @transform_2(%arg0: i32) -> (i32, i32, i32) {
    %c0_i32 = arith.constant 0 : i32
    %c0_i32_0 = arith.constant 0 : i32
    %c0_i32_1 = arith.constant 0 : i32
    return %arg0, %c0_i32, %c0_i32_0 : i32, i32, i32
  }
  func.func @transform_3(%arg0: i32) -> (i32, i32, i32) {
    %c0_i32 = arith.constant 0 : i32
    %c0_i32_0 = arith.constant 0 : i32
    %c0_i32_1 = arith.constant 0 : i32
    return %arg0, %c0_i32, %c0_i32_0 : i32, i32, i32
  }
}

</mosaic_0001>

<bundles_post_ra>
// kernel: tpu_custom_call.1
= control target key start
LH: loop header
LB: loop body
LE: loop exit
PB: predicated region body
PF: predicated region fallthrough
CT: control target
= control target key end

     0   :  { %s967_s0 = inlined_call_operand.<no memory space> [shape: f32[1], index: 0, kind: input, shape index: {}]   ;;  %s968_s1 = inlined_call_operand.hbm [shape: f32[2,8,32], index: 1, kind: input, shape index: {}]   ;;  %s969_s2 = inlined_call_operand.hbm [shape: f32[2,8,32], index: 2, kind: input, shape index: {}]   ;;  %s970_s3 = inlined_call_operand.hbm [shape: f32[2,8,128], index: 3, kind: output, shape index: {}]  }
   0x1   :  { %8 = sst [smem:[#allocation2]] %s967_s0 }
   0x2   :  { %9 = vsyncpa [#allocation4], 0 }
   0x3   :  { %11 = vsyncpa [#allocation4 + $0x1], 0 }
   0x4   :  { %12 = vsyncpa [#allocation7], 0 }
   0x5   :  { %14 = vsyncpa [#allocation7 + $0x1], 0 }
   0x6   :  { %15 = vsyncpa [#allocation5], 0 }
   0x7   :  { %17 = vsyncpa [#allocation5 + $0x1], 0  ;;  %s746_s14 = smov 0   ;;  %s748_s15 = smov 0  }
   0x8   :  { %s750_s16 = smov 0   ;;  %s752_s17 = smov 0  }
   0x9 LB: > { %s767_s0 = sadd.s32 4294967295, %s715_s17   ;;  %s494_s18 = sadd.s32 4294967294, %s715_s17   ;;  %s715_s17 = sphi %s752_s17, %s989_s17   ;;  %s711_s16 = sphi %s750_s16, %s988_s16   ;;  %s707_s15 = sphi %s748_s15, %s987_s15   ;;  %s703_s14 = sphi %s746_s14, %s986_s14  }
   0xa   : > { %s771_s19 = sadd.s32 1, %s715_s17   ;;  %s51_s20 = sadd.s32 1, %s711_s16 }
   0xb   : > { %s48_s21 = ssub.s32 %s715_s17, %s771_s19  ;;  %p58_p0 = scmp.ne.s32.totalorder %s711_s16, %s707_s15 }
   0xc   : > { %p49_p1 = scmp.eq.s32.totalorder %s48_s21, 0  ;;  %p59_p2 = scmp.eq.s32.totalorder %s715_s17, 0 }
   0xd   : > { %p64_p3 = scmp.ne.s32.totalorder %s707_s15, %s703_s14  ;;  %p65_p4 = scmp.eq.s32.totalorder %s767_s0, 0 }
   0xe   : > { %s783_s22 = scalar_select %p49_p1, %s711_s16, %s51_s20  }
   0xf   : > { %p785_p5 = por %p59_p2, %p58_p0  ;;  %p789_p6 = por %p65_p4, %p64_p3 }
  0x10   : > { %p114_p7 = scmp.eq.s32.totalorder %s767_s0, 1  ;;  %p120_p8 = scmp.eq.s32.totalorder %s494_s18, 1 }
  0x11   : > { %s974_s24 = scalar_select %p789_p6, 1, 0 }
  0x12   : > { %p537_p10 = scmp.lt.s32.totalorder %s715_s17, 2  ;;  %p796_p11 = por %p114_p7, %p58_p0 }
  0x13   : > { %p800_p12 = por %p120_p8, %p64_p3  ;;  %s805_s27 = sand.u32 1, %s711_s16  }
  0x14   : > { %s975_s25 = scalar_select %p796_p11, 1, 0 }
  0x15   : > { %s976_s26 = scalar_select %p800_p12, 1, 0 }
  0x16   : > { %s498_s28 = sshll.u32 %s715_s17, 7  ;;  %s497_s29 = sshll.u32 %s805_s27, 3 }
  0x17   : > { %s814_s5 = scalar_lea.hbm %s968_s1, %s498_s28  ;;  %s147_s6 = scalar_lea.vmem [#allocation3], %s497_s29 }
  0x18   : > { %s154_s7 = sshll.u32 %s147_s6, 4  ;;  %p820_p13 = pnand %p537_p10, %p785_p5  ;;  %s824_s7 = int_to_ptr.vmem [resolvable:$true] %s154_s7 }
  0x19   : > { %s144_s9 = scalar_lea.sflag [#allocation4], %s805_s27  ;;  %s585_s10 = scalar_lea.hbm %s814_s5, 128 }
  0x1a   : > { %p586_p2 = scmp.ne.s32.totalorder %s814_s5, %s585_s10  ;;  %p587_p3 = pneg %p820_p13 }
  0x1b   : > { %s590_s13 = scalar_lea.hbm %s968_s1, 256  ;;  %p591_p5 = scmp.lt.u32.totalorder %s814_s5, %s968_s1 }
  0x1c   : > { %p588_p4 = pnand %p587_p3, %p586_p2  ;;  %p592_p8 = scmp.lt.u32.totalorder %s590_s13, %s585_s10 }
  0x1d   : > { %p594_p9 = scmp.lt.u32.totalorder %s585_s10, %s814_s5 }
  0x1e   : > { %p589_p7 = pneg %p588_p4  ;;  %p593_p10 = por %p592_p8, %p591_p5 }
  0x20   : > { %p595_p0 = por %p594_p9, %p593_p10 }
  0x22   : > { %p596_p1 = pnand %p595_p0, %p589_p7 }
  0x24   : > { %599 = shalt.err (!%p596_p1)
}
  0x25   : > { %s600_s21 = scalar_lea.vmem %s824_s7, 128  ;;  %s717_s23 = smov [#allocation3]  }
  0x26   : > { %p601_p2 = scmp.ne.s32.totalorder %s824_s7, %s600_s21  ;;  %s605_s30 = sshll.u32 %s717_s23, 4  ;;  %s606_s30 = int_to_ptr.vmem [resolvable:$false] %s605_s30 }
  0x27   : > { %s607_s4 = scalar_lea.vmem %s606_s30, 256  ;;  %p608_p11 = scmp.lt.s32.totalorder %s824_s7, %s606_s30 }
  0x28   : > { %p603_p4 = pnand %p601_p2, %p587_p3  ;;  %p609_p5 = scmp.lt.s32.totalorder %s607_s4, %s600_s21 }
  0x2a   : > { %p604_p12 = pneg %p603_p4  ;;  %p610_p8 = por %p609_p5, %p608_p11 }
  0x2c   : > { %p611_p9 = pnand %p610_p8, %p604_p12 }
  0x2e   : > { %614 = shalt.err (!%p611_p9)
}
  0x2f   : > { %529 = dma.hbm_to_vmem [thread:$0]  (!%p820_p13), %s814_s5, 128, %s824_s7, %s144_s9  }
  0x30   : > { %p978_p0 = scmp.lt.s32.totalorder %s715_s17, 3  ;;  %p979_p1 = scmp.ge.s32.totalorder %s715_s17, 1 }
  0x31   : > { %s867_s12 = scalar_lea.hbm %s969_s2, %s498_s28  ;;  %s165_s13 = scalar_lea.vmem [#allocation6], %s497_s29 }
  0x32   : > { %p858_p7 = pnand %p979_p1, %p978_p0  ;;  %s172_s18 = sshll.u32 %s165_s13, 4  ;;  %s173_s18 = int_to_ptr.vmem [resolvable:$true] %s172_s18 }
  0x33   : > { %s162_s5 = scalar_lea.sflag [#allocation7], %s805_s27  ;;  %s615_s7 = scalar_lea.hbm %s867_s12, 128 }
  0x34   : > { %s980_s6 = scalar_select %p858_p7, 1, 0 }
  0x35   : > { %p616_p11 = scmp.ne.s32.totalorder %s867_s12, %s615_s7  ;;  %s620_s28 = scalar_lea.hbm %s969_s2, 256 }
  0x36   : > { %p621_p2 = scmp.lt.u32.totalorder %s867_s12, %s969_s2  ;;  %p622_p4 = scmp.lt.u32.totalorder %s620_s28, %s615_s7 }
  0x37   : > { %p618_p12 = pnand %p616_p11, %p587_p3  ;;  %p624_p8 = scmp.lt.u32.totalorder %s615_s7, %s867_s12 }
  0x38   : > { %p623_p5 = por %p622_p4, %p621_p2 }
  0x39   : > { %p619_p10 = pneg %p618_p12 }
  0x3a   : > { %p625_p9 = por %p624_p8, %p623_p5 }
  0x3c   : > { %p626_p0 = pnand %p625_p9, %p619_p10 }
  0x3e   : > { %629 = shalt.err (!%p626_p0)
}
  0x3f   : > { %s630_s27 = scalar_lea.vmem %s173_s18, 128  ;;  %s718_s29 = smov [#allocation6]  }
  0x40   : > { %p631_p1 = scmp.ne.s32.totalorder %s173_s18, %s630_s27  ;;  %s635_s30 = sshll.u32 %s718_s29, 4  ;;  %s636_s30 = int_to_ptr.vmem [resolvable:$false] %s635_s30 }
  0x41   : > { %s637_s4 = scalar_lea.vmem %s636_s30, 256  ;;  %p638_p6 = scmp.lt.s32.totalorder %s173_s18, %s636_s30 }
  0x42   : > { %p633_p11 = pnand %p631_p1, %p587_p3  ;;  %p639_p7 = scmp.lt.s32.totalorder %s637_s4, %s630_s27 }
  0x44   : > { %p634_p12 = pneg %p633_p11  ;;  %p640_p2 = por %p639_p7, %p638_p6 }
  0x46   : > { %p641_p4 = pnand %p640_p2, %p634_p12 }
  0x48   : > { %644 = shalt.err (!%p641_p4)
}
  0x49   : > { %532 = dma.hbm_to_vmem [thread:$0]  (!%p820_p13), %s867_s12, 128, %s173_s18, %s162_s5  }
  0x4a   : > { %p981_p10 = scmp.ne.s32.totalorder %s980_s6, 0 }
  0x4b   : > { %s894_s10 = sand.u32 (!%p981_p10), 1, %s707_s15   ;;  %p982_p6 = scmp.ne.s32.totalorder (!%p981_p10), %s974_s24, 0 }
  0x4c   : > { %181 = sbr.rel (%p981_p10) target bundleno = 1151 (0x47f), region = 32  ;;  %s897_s11 = sshll.u32 (!%p981_p10), %s894_s10, 3 }
  0x4d   : > { %s184_s13 = scalar_lea.sflag (!%p981_p10), [#allocation4], %s894_s10  ;;  %s187_s7 = scalar_lea.vmem (!%p981_p10), [#allocation3], %s897_s11 }
  0x53   : > { %690 = dma.done.wait (%p982_p6), %s184_s13, 128  }
  0x54   : > { %692 = vsyncadd (%p982_p6), %s184_s13, 4294967168  ;;  %s193_s8 = scalar_lea.sflag [#allocation7], %s894_s10  ;;  %s196_s6 = scalar_lea.vmem [#allocation6], %s897_s11 }
  0x55   : > { %694 = dma.done.wait (%p982_p6), %s193_s8, 128  }
  0x56   : > { %696 = vsyncadd (%p982_p6), %s193_s8, 4294967168  ;;  %v225_v0 = vld [vmem:[%s196_s6] sm:$0xff]  ;;  %vm228_vm0 = vcmask 261120   ;;  %v224_v1 = vld [vmem:[%s187_s7] sm:$0xff]  ;;  %v719_v6 = vmov 0.0   ;;  %vm720_vm1 = vmmov 0   ;;  %v366_v54 = vlaneseq }
  0x57   : > { %v237_v2 = vmul.f32 %v225_v0, %v225_v0  ;;  %v227_v3 = vmul.f32 %v224_v1, %v224_v1  ;;  %513 = vmatprep.subr.mxu0 %v719_v6  ;;  %515 = vmatprep.mubr.msk.f32.mxu0 %vm720_vm1, %v719_v6  ;;  %s226_s24 = sld [smem:[#allocation2]]  ;;  %vm324_vm2 = vcmask 64512   ;;  %v721_v39 = vmov 0   ;;  %s223_s12 = scalar_lea.vmem [#allocation8], %s897_s11 }
  0x58   : > { %574 = vset.pattern.permute.xlu0 %v721_v39  ;;  %v367_v55 = vand.u32 127, %v366_v54  ;;  %v369_v56 = vshrl.u32 %v366_v54, 7  ;;  %vm373_vm3 = vcmask 57344   ;;  %s401_s18 = sshll.u32 %s223_s12, 4  ;;  %s508_s5 = sshll.u32 %s767_s0, 7  ;;  %s920_s18 = int_to_ptr.vmem [resolvable:$true] %s401_s18 }
  0x59   : > { %v238_v4 = vsel %vm228_vm0, %v237_v2, 0.0  ;;  %v229_v5 = vsel %vm228_vm0, %v227_v3, 0.0  ;;  %s925_s21 = scalar_lea.hbm %s970_s3, %s508_s5  ;;  %s388_s23 = scalar_lea.sflag [#allocation5], %s894_s10 }
  0x5a   : > { %239 = vadd.xlane.f32.xlu0 %v238_v4  ;;  %v370_v57 = vsub.s32 %v367_v55, %v369_v56  ;;  %s645_s27 = scalar_lea.vmem %s920_s18, 128  ;;  %p983_p3 = scmp.ne.s32.totalorder %s975_s25, 0 }
  0x5b   : > { %p646_p13 = scmp.ne.s32.totalorder %s920_s18, %s645_s27  ;;  %s722_s0 = smov [#allocation8]  }
  0x5c   : > { %s649_s29 = sshll.u32 %s722_s0, 4  ;;  %s650_s29 = int_to_ptr.vmem [resolvable:$false] %s649_s29 }
  0x5d   : > { %v234_v13 = vstv %s226_s24  ;;  %p647_p7 = pnand %p646_p13, %p983_p3  ;;  %s651_s30 = scalar_lea.vmem %s650_s29, 256 }
  0x5e   : > { %230 = vadd.xlane.f32.xlu0 %v229_v5  ;;  %p652_p8 = scmp.lt.s32.totalorder %s920_s18, %s650_s29  ;;  %p653_p9 = scmp.lt.s32.totalorder %s651_s30, %s645_s27 }
  0x5f   : > { %p648_p5 = pneg %p647_p7 }
  0x60   : > { %p654_p0 = por %p653_p9, %p652_p8 }
  0x62   : > { %p655_p1 = pnand %p654_p0, %p648_p5 }
  0xe7   : > { %v240_v7 = vpop.xlane.xlu0 %239 }
  0xe8   : > { %v241_v8 = vmax.f32 %v240_v7, 1e-24 }
  0xea   : > { %575 = vrsqrt.f32 %v241_v8 }
  0xeb   : > { %v231_v9 = vpop.xlane.xlu0 %230 }
  0xec   : > { %v232_v10 = vmax.f32 %v231_v9, 1e-24 }
  0xee   : > { %577 = vrsqrt.f32 %v232_v10 }
  0xf4   : > { %v576_v11 = vpop.eup %575 }
  0xf5   : > { %v243_v12 = vmul.f32 %v576_v11, %v225_v0 }
  0xf7   : > { %514 = vmatpush3.xpose.msk.msra.mxu0 %vm228_vm0, %v243_v12 }
  0xf8   : > { %v578_v14 = vpop.eup %577 }
  0xf9   : > { %v235_v15 = vmul.f32 %v578_v14, %v234_v13 }
  0xfb   : > { %v236_v16 = vmul.f32 %v235_v15, %v224_v1 }
  0xfd   : > { %516 = vmatmul.mubr.msk.f32.vlgmr.msra.gmra.mrb[0].mxu0 %vm228_vm0, %v236_v16  ;;  %v244_v17 = vmul.f32 %v243_v12, %v236_v16 }
  0xff   : > { %v245_v21 = vsel %vm228_vm0, %v244_v17, 0.0 }
 0x1d0   : > { %v320_v18 = vpop.f32.mrb[0].mxu0 }
 0x1d1   : > { %v517_v19 = vpop.f32.mrb[1].mxu0  ;;  %v325_v20 = vsel %vm324_vm2, %v320_v18, -inf }
 0x1d2   : > { %326 = vmax.xlane.f32.xlu1 %v325_v20 }
 0x1d6   : > { %246 = vadd.xlane.f32.xlu1 %v245_v21 }
 0x25f   : > { %v327_v22 = vpop.xlane.xlu1 %326 }
 0x260   : > { %v328_v23 = vrot.slane %v327_v22, 4 }
 0x262   : > { %v329_v24 = vmax.f32 %v327_v22, %v328_v23 }
 0x263   : > { %v247_v40 = vpop.xlane.xlu1 %246 }
 0x264   : > { %v330_v25 = vrot.slane %v329_v24, 2 }
 0x266   : > { %v331_v26 = vmax.f32 %v329_v24, %v330_v25 }
 0x268   : > { %v332_v27 = vrot.slane %v331_v26, 1 }
 0x26a   : > { %v333_v28 = vmax.f32 %v331_v26, %v332_v27 }
 0x26c   : > { %v334_v29 = vsub.f32 %v320_v18, %v333_v28  ;;  %v352_v41 = vsub.f32 %v247_v40, %v333_v28 }
 0x26e   : > { %v335_v30 = vmul.f32 1.442695, %v334_v29  ;;  %v353_v42 = vmul.f32 1.442695, %v352_v41 }
 0x270   : > { %579 = vpow2.f32 %v335_v30 }
 0x271   : > { %581 = vpow2.f32 %v353_v42 }
 0x27a   : > { %v580_v31 = vpop.eup %579 }
 0x27b   : > { %v337_v32 = vsel %vm324_vm2, %v580_v31, 0.0  ;;  %v582_v43 = vpop.eup %581 }
 0x27c   : > { %338 = vadd.xlane.f32.xlu0 %v337_v32  ;;  %v340_v33 = vrot.slane %v337_v32, 4  ;;  %v355_v47 = vmul.f32 2.0, %v582_v43 }
 0x27e   : > { %v341_v34 = vadd.f32 %v340_v33, %v337_v32 }
 0x280   : > { %v342_v35 = vrot.slane %v341_v34, 2 }
 0x282   : > { %v343_v36 = vadd.f32 %v342_v35, %v341_v34 }
 0x284   : > { %v344_v37 = vrot.slane %v343_v36, 1 }
 0x286   : > { %v345_v38 = vadd.f32 %v344_v37, %v343_v36 }
 0x288   : > { %348 = vbcast.lane.b32.xlu1 %v345_v38, 256 }
 0x2fa   : > { %v349_v44 = vpop.permute.xlu1 %348 }
 0x309   : > { %v339_v45 = vpop.xlane.xlu0 %338 }
 0x30a   : > { %v351_v46 = vadd.f32 %v349_v44, %v339_v45 }
 0x30c   : > { %v356_v48 = vsub.f32 %v351_v46, %v355_v47 }
 0x30e   : > { %v357_v49 = vmax.f32 %v356_v48, 1e-30 }
 0x310   : > { %583 = vlog2.f32 %v357_v49 }
 0x31a   : > { %v584_v50 = vpop.eup %583 }
 0x31b   : > { %v359_v51 = vmul.f32 0.6931472, %v584_v50 }
 0x31d   : > { %v360_v52 = vadd.f32 %v359_v51, %v333_v28 }
 0x31f   : > { %v361_v53 = vsub.f32 %v360_v52, %v247_v40 }
 0x321   : > { %364 = vperm.xlu0 %574, %v361_v53  }
 0x3a0   : > { %v365_v58 = vpop.permute.xlu0 %364 }
 0x3a1   : > { %v371_v59 = vrot.slane %v365_v58, %v370_v57 }
 0x3a3   : > { %v374_v60 = vsel %vm373_vm3, %v371_v59, 0.0 }
 0x3a4   : > { %375 = vadd.xlane.f32.xlu1 %v374_v60 }
 0x431   : > { %v376_v61 = vpop.xlane.xlu1 %375 }
 0x432   : > { %v377_v62 = vrot.slane %v376_v61, 4 }
 0x434   : > { %v378_v63 = vadd.f32 %v377_v62, %v376_v61 }
 0x436   : > { %v379_v0 = vrot.slane %v378_v63, 2 }
 0x438   : > { %v380_v1 = vadd.f32 %v379_v0, %v378_v63 }
 0x43a   : > { %v381_v2 = vrot.slane %v380_v1, 1 }
 0x43c   : > { %v382_v3 = vadd.f32 %v381_v2, %v380_v1 }
 0x43e   : > { %518 = vpush %v382_v3 }
 0x46f   : > { %s519_s9 = spop %518 }
 0x470   : > { %v384_v4 = vstv %s519_s9 }
 0x471   : > { %386 = vst [vmem:[%s223_s12] sm:$0xff] %v384_v4 }
 0x472   : > { %658 = shalt.err (!%p655_p1)
}
 0x473   : > { %s659_s4 = scalar_lea.hbm %s925_s21, 128  ;;  %s663_s13 = scalar_lea.hbm %s970_s3, 256 }
 0x474   : > { %p660_p11 = scmp.ne.s32.totalorder %s925_s21, %s659_s4  ;;  %p664_p4 = scmp.lt.u32.totalorder %s925_s21, %s970_s3 }
 0x475   : > { %p665_p10 = scmp.lt.u32.totalorder %s663_s13, %s659_s4  ;;  %p667_p13 = scmp.lt.u32.totalorder %s659_s4, %s925_s21 }
 0x476   : > { %p661_p12 = pnand %p660_p11, %p983_p3 }
 0x477   : > { %p666_p6 = por %p665_p10, %p664_p4 }
 0x478   : > { %p662_p2 = pneg %p661_p12 }
 0x479   : > { %p668_p7 = por %p667_p13, %p666_p6 }
 0x47b   : > { %p669_p5 = pnand %p668_p7, %p662_p2 }
 0x47d   : > { %672 = shalt.err (!%p669_p5)
}
 0x47e   : > { %524 = dma.vmem_to_hbm [thread:$0]  (%p983_p3), %s920_s18, 128, %s925_s21, %s388_s23  }
 0x47f PF: > { %s413_s6 = sand.u32 1, %s703_s14   ;;  %p984_p8 = scmp.ne.s32.totalorder %s976_s26, 0 }
 0x480   : > { %p985_p9 = scmp.ge.s32.totalorder %s715_s17, 2  ;;  %s414_s24 = scalar_lea.sflag [#allocation5], %s413_s6 }
 0x482   : > { %p534_p0 = pnand %p985_p9, %p984_p8 }
 0x484   : > { %698 = dma.done.wait (!%p534_p0), %s414_s24, 128  }
 0x485   : > { %700 = vsyncadd (!%p534_p0), %s414_s24, 4294967168  ;;  %p20_p1 = scmp.ge.s32.totalorder %s771_s19, 4   ;;  %s986_s14 = smov %s707_s15 }
 0x486   : > { %s987_s15 = smov %s711_s16  ;;  %s988_s16 = smov %s783_s22 }
 0x487   : > { %s989_s17 = smov %s771_s19  ;;  %22 = sbr.rel (!%p20_p1) target bundleno = 9 (0x9), region = 90 }
 0x48e   :  { %419 = vsyncpa [#allocation4], 1 }
 0x48f   :  { %421 = vsyncpa [#allocation4 + $0x1], 1 }
 0x490   :  { %422 = vsyncpa [#allocation7], 1 }
 0x491   :  { %424 = vsyncpa [#allocation7 + $0x1], 1 }
 0x492   :  { %425 = vsyncpa [#allocation5], 1 }
 0x493   :  { %427 = vsyncpa [#allocation5 + $0x1], 1 }

</bundles_post_ra>
